<compile_context>
chip_gen: v6e
topology: v6e:2x2x1
jax: 0.10.0
libtpu: 0.0.40
codegen_flags: <defaults>
</compile_context>

<pallas_src>
import functools

import jax
import jax.numpy as jnp
from jax.experimental import pallas as pl
from jax.experimental.pallas import tpu as pltpu


def _point_similarity_kernel(vp_i_ref, vp_all_ref, ep_ref, mask_ref,
                             w1_ref, b1_ref, w2_ref, b2_ref, w3_ref, b3_ref,
                             ep_out_ref, nsim_ref, *, l2):
    # vp_i_ref: (1, TN, D)  rows of this tile
    # vp_all_ref: (1, N, D) all rows (resident across the tile axis)
    # ep_ref: (1, TN, N), mask_ref: (TN, N) = (1 - eye) rows of this tile
    vp_i = vp_i_ref[0]                           # (TN, D)
    vp_all = vp_all_ref[0]                       # (N, D)
    tn, d = vp_i.shape
    n = vp_all.shape[0]

    # Pairwise similarity features, (TN, N, D).
    diff = vp_i[:, None, :] - vp_all[None, :, :]
    sim = diff * diff if l2 else jnp.abs(diff)

    # node_similarity_l2 = -sum_d sim  -> lane-dense (TN, N) store.
    nsim_ref[0] = -jnp.sum(sim, axis=-1)

    # Per-(i,j) 1x1-conv MLP over the D channel dim (BN folded into weights).
    x = sim.reshape(tn * n, d)                   # last dim unchanged -> cheap reshape
    h = jnp.dot(x, w1_ref[...], preferred_element_type=jnp.float32) + b1_ref[...]
    h = jnp.where(h >= 0, h, 0.01 * h)           # LeakyReLU(0.01)
    h = jnp.dot(h, w2_ref[...], preferred_element_type=jnp.float32) + b2_ref[...]
    h = jnp.where(h >= 0, h, 0.01 * h)
    c = h.shape[-1]
    h3 = h.reshape(tn, n, c)                     # last dim unchanged -> cheap reshape
    w3 = w3_ref[...].reshape(1, 1, c)
    logits = jnp.sum(h3 * w3, axis=-1) + b3_ref[0]          # (TN, N)
    # sigmoid via EUP exp + approximate reciprocal (EUP slot, effectively free).
    e_sig = pl.reciprocal(1.0 + jnp.exp(-logits), approx=True)

    # Edge re-normalization.
    mask = mask_ref[...]                          # (TN, N) = 1 - eye
    ep_m = ep_ref[0] * mask                       # zero the diagonal
    ep_sum = jnp.sum(ep_m, axis=-1, keepdims=True)            # (TN, 1)
    prod = e_sig * ep_m
    l1 = jnp.maximum(jnp.sum(jnp.abs(prod), axis=-1, keepdims=True), 1e-12)
    ep_ij = prod * (pl.reciprocal(l1, approx=True) * ep_sum)  # L1-normalize * ep_sum
    ep_ij = ep_ij + (1.0 - mask) + 1e-6                       # + eye + 1e-6
    row_sum = jnp.sum(ep_ij, axis=-1, keepdims=True)
    ep_out_ref[0] = ep_ij * pl.reciprocal(row_sum, approx=True)


def _choose_row_tile(n, d, c1):
    """Largest TN (multiple of 8, exact divisor of N) keeping the dominant per-tile
    f32 intermediate (TN, N, max(D, 2*base_c)) around ~4 MiB; full N for small N."""
    if n <= 128:
        return n
    budget = 4 * 1024 * 1024
    tn = budget // (n * max(d, c1) * 4)
    tn = min(n, max(8, (tn // 8) * 8))
    while n % tn:
        tn -= 8
        if tn < 8:
            return n
    return tn


@functools.partial(jax.jit, static_argnames=("base_c", "distance_metric"))
def point_similarity_forward(vp_last_gen, ep_last_gen, params, *, base_c,
                             distance_metric="l2"):
    if distance_metric not in ("l1", "l2"):
        raise ValueError(f"unsupported distance_metric: {distance_metric}")
    B, N, D = vp_last_gen.shape
    c1 = 2 * base_c
    eps = 1e-5

    # Fold eval-mode BatchNorm into the bias-free 1x1 conv weights (exact).
    s1 = params["gamma1"] / jnp.sqrt(params["var1"] + eps)
    b1 = (params["beta1"] - params["mean1"] * s1).reshape(1, c1)
    s2 = params["gamma2"] / jnp.sqrt(params["var2"] + eps)
    b2 = (params["beta2"] - params["mean2"] * s2).reshape(1, base_c)
    w1 = params["w1"].reshape(c1, D).T * s1[None, :]          # (D, c1)
    w2 = params["w2"].reshape(base_c, c1).T * s2[None, :]     # (c1, base_c)
    w3 = params["w3"].reshape(1, base_c)                      # (1, base_c)
    b3 = params["b3"].reshape(1).astype(jnp.float32)          # (1,) scalar bias -> SMEM

    off_diag = 1.0 - jnp.eye(N, dtype=jnp.float32)            # (N, N) precomputed mask

    TN = _choose_row_tile(N, D, c1)
    grid = (B, N // TN)

    grid_spec = pltpu.PrefetchScalarGridSpec(
        num_scalar_prefetch=0,
        grid=grid,
        in_specs=[
            pl.BlockSpec((1, TN, D), lambda b, t: (b, t, 0)),   # vp rows of this tile
            pl.BlockSpec((1, N, D), lambda b, t: (b, 0, 0)),    # vp all rows (resident)
            pl.BlockSpec((1, TN, N), lambda b, t: (b, t, 0)),   # ep rows of this tile
            pl.BlockSpec((TN, N), lambda b, t: (t, 0)),         # (1 - eye) rows
            pl.BlockSpec((D, c1), lambda b, t: (0, 0)),         # W1 (BN1 folded)
            pl.BlockSpec((1, c1), lambda b, t: (0, 0)),         # b1
            pl.BlockSpec((c1, base_c), lambda b, t: (0, 0)),    # W2 (BN2 folded)
            pl.BlockSpec((1, base_c), lambda b, t: (0, 0)),     # b2
            pl.BlockSpec((1, base_c), lambda b, t: (0, 0)),     # w3
            pl.BlockSpec(memory_space=pltpu.MemorySpace.SMEM),  # b3 scalar
        ],
        out_specs=[
            pl.BlockSpec((1, TN, N), lambda b, t: (b, t, 0)),   # ep_ij
            pl.BlockSpec((1, TN, N), lambda b, t: (b, t, 0)),   # node_similarity_l2
        ],
    )

    kernel = functools.partial(_point_similarity_kernel,
                               l2=(distance_metric == "l2"))
    # TODO(synk): Dropout2d only matters for dropout > 0 in training mode;
    # module default p = 0.0 -> identity, so it is omitted.
    ep_ij, node_sim = pl.pallas_call(
        kernel,
        out_shape=(jax.ShapeDtypeStruct((B, N, N), jnp.float32),
                   jax.ShapeDtypeStruct((B, N, N), jnp.float32)),
        grid_spec=grid_spec,
        compiler_params=pltpu.CompilerParams(
            dimension_semantics=("parallel", "parallel"),
            vmem_limit_bytes=32 * 1024 * 1024),
    )(vp_last_gen, vp_last_gen, ep_last_gen, off_diag,
      w1, b1, w2, b2, w3, b3)
    return ep_ij, node_sim


def _reference(vp, ep, params, base_c, distance_metric):
    """Pure-JAX reference of the PyTorch forward (eval-mode BN, un-folded)."""
    B, N, D = vp.shape
    eps = 1e-5
    diff = vp[:, :, None, :] - vp[:, None, :, :]              # (B, N, N, D)
    sim = diff ** 2 if distance_metric == "l2" else jnp.abs(diff)
    node_sim = -jnp.sum(sim, -1)

    def bn(x, g, b, m, v):
        return (x - m) / jnp.sqrt(v + eps) * g + b

    w1 = params["w1"].reshape(2 * base_c, D)
    h = jnp.einsum("bijd,cd->bijc", sim, w1)
    h = bn(h, params["gamma1"], params["beta1"], params["mean1"], params["var1"])
    h = jnp.where(h >= 0, h, 0.01 * h)
    w2 = params["w2"].reshape(base_c, 2 * base_c)
    h = jnp.einsum("bijc,oc->bijo", h, w2)
    h = bn(h, params["gamma2"], params["beta2"], params["mean2"], params["var2"])
    h = jnp.where(h >= 0, h, 0.01 * h)
    w3 = params["w3"].reshape(1, base_c)
    logits = jnp.einsum("bijc,oc->bijo", h, w3)[..., 0] + params["b3"][0]
    e_sig = jax.nn.sigmoid(logits)

    mask = 1.0 - jnp.eye(N)[None]
    ep_m = ep * mask
    ep_sum = jnp.sum(ep_m, -1, keepdims=True)
    prod = e_sig * ep_m
    l1 = jnp.maximum(jnp.sum(jnp.abs(prod), -1, keepdims=True), 1e-12)
    ep_ij = prod / l1 * ep_sum
    ep_ij = ep_ij + jnp.eye(N)[None] + 1e-6
    ep_ij = ep_ij / jnp.sum(ep_ij, -1, keepdims=True)
    return ep_ij, node_sim


if __name__ == "__main__":
    B, N, D = 2, 8, 16            # vp_last_gen: (B, N, D), in_c = D
    base_c = 16
    c1 = 2 * base_c

    key = jax.random.PRNGKey(0)
    ks = jax.random.split(key, 14)
    vp = jax.random.normal(ks[0], (B, N, D), jnp.float32)
    ep = jax.random.uniform(ks[1], (B, N, N), jnp.float32)

    params = {
        # Conv2d(D, 2*base_c, 1, bias=False): (2*base_c, D, 1, 1)
        "w1": jax.random.normal(ks[2], (c1, D, 1, 1), jnp.float32) * 0.1,
        "gamma1": 1.0 + 0.1 * jax.random.normal(ks[3], (c1,), jnp.float32),
        "beta1": 0.1 * jax.random.normal(ks[4], (c1,), jnp.float32),
        "mean1": 0.1 * jax.random.normal(ks[5], (c1,), jnp.float32),
        "var1": jax.random.uniform(ks[6], (c1,), jnp.float32, minval=0.5, maxval=1.5),
        # Conv2d(2*base_c, base_c, 1, bias=False): (base_c, 2*base_c, 1, 1)
        "w2": jax.random.normal(ks[7], (base_c, c1, 1, 1), jnp.float32) * 0.1,
        "gamma2": 1.0 + 0.1 * jax.random.normal(ks[8], (base_c,), jnp.float32),
        "beta2": 0.1 * jax.random.normal(ks[9], (base_c,), jnp.float32),
        "mean2": 0.1 * jax.random.normal(ks[10], (base_c,), jnp.float32),
        "var2": jax.random.uniform(ks[11], (base_c,), jnp.float32, minval=0.5, maxval=1.5),
        # Conv2d(base_c, 1, 1, bias=True): (1, base_c, 1, 1) + (1,)
        "w3": jax.random.normal(ks[12], (1, base_c, 1, 1), jnp.float32) * 0.1,
        "b3": 0.1 * jax.random.normal(ks[13], (1,), jnp.float32),
    }

    for metric in ("l2", "l1"):
        ep_ij, node_sim = point_similarity_forward(
            vp, ep, params, base_c=base_c, distance_metric=metric)
        ep_ij, node_sim = jax.block_until_ready((ep_ij, node_sim))
        ep_ref, ns_ref = _reference(vp, ep, params, base_c, metric)

        assert ep_ij.shape == (B, N, N), ep_ij.shape
        assert node_sim.shape == (B, N, N), node_sim.shape
        # node_similarity is exact f32 arithmetic.
        assert jnp.allclose(node_sim, ns_ref, atol=1e-4, rtol=1e-4), (
            metric, float(jnp.max(jnp.abs(node_sim - ns_ref))))
        # ep_ij uses approx (EUP) reciprocals for sigmoid + row normalizations,
        # so allow a slightly looser tolerance vs. the exact-division reference.
        assert jnp.allclose(ep_ij, ep_ref, atol=2e-3, rtol=2e-3), (
            metric, float(jnp.max(jnp.abs(ep_ij - ep_ref))))

    print("KERNEL_OK")
</pallas_src>

<mosaic_0001>
module attributes {stable_mosaic.version = 11 : i64} {
  func.func @_point_similarity_kernel(%arg0: i32, %arg1: i32, %arg2: memref<1x8x16xf32, #tpu.memory_space<vmem>>, %arg3: memref<1x8x16xf32, #tpu.memory_space<vmem>>, %arg4: memref<1x8x8xf32, #tpu.memory_space<vmem>>, %arg5: memref<8x8xf32, #tpu.memory_space<vmem>>, %arg6: memref<16x32xf32, #tpu.memory_space<vmem>>, %arg7: memref<1x32xf32, #tpu.memory_space<vmem>>, %arg8: memref<32x16xf32, #tpu.memory_space<vmem>>, %arg9: memref<1x16xf32, #tpu.memory_space<vmem>>, %arg10: memref<1x16xf32, #tpu.memory_space<vmem>>, %arg11: memref<1xf32, #tpu.memory_space<smem>>, %arg12: memref<1x8x8xf32, #tpu.memory_space<vmem>>, %arg13: memref<1x8x8xf32, #tpu.memory_space<vmem>>) attributes {dimension_semantics = [#tpu.dimension_semantics<parallel>, #tpu.dimension_semantics<parallel>], iteration_bounds = array<i64: 2, 1>, scalar_prefetch = 0 : i64, scratch_operands = 0 : i64, tpu.core_type = #tpu.core_type<tc>, window_params = [{transform_indices = @transform_0, window_bounds = array<i64: 1, 8, 16>}, {transform_indices = @transform_1, window_bounds = array<i64: 1, 8, 16>}, {transform_indices = @transform_2, window_bounds = array<i64: 1, 8, 8>}, {transform_indices = @transform_3, window_bounds = array<i64: 8, 8>}, {pipeline_mode = #tpu.pipeline_mode<synchronous>, transform_indices = @transform_4, window_bounds = array<i64: 16, 32>}, {pipeline_mode = #tpu.pipeline_mode<synchronous>, transform_indices = @transform_5, window_bounds = array<i64: 1, 32>}, {pipeline_mode = #tpu.pipeline_mode<synchronous>, transform_indices = @transform_6, window_bounds = array<i64: 32, 16>}, {pipeline_mode = #tpu.pipeline_mode<synchronous>, transform_indices = @transform_7, window_bounds = array<i64: 1, 16>}, {pipeline_mode = #tpu.pipeline_mode<synchronous>, transform_indices = @transform_8, window_bounds = array<i64: 1, 16>}, {transform_indices = @transform_9, window_bounds = array<i64: 1>}, {transform_indices = @transform_10, window_bounds = array<i64: 1, 8, 8>}, {transform_indices = @transform_11, window_bounds = array<i64: 1, 8, 8>}]} {
    %c0 = arith.constant 0 : index
    %c0_0 = arith.constant 0 : index
    %c0_1 = arith.constant 0 : index
    %0 = vector.load %arg2[%c0, %c0_0, %c0_1] : memref<1x8x16xf32, #tpu.memory_space<vmem>>, vector<1x8x16xf32>
    %1 = vector.shape_cast %0 : vector<1x8x16xf32> to vector<8x16xf32>
    %c0_2 = arith.constant 0 : index
    %c0_3 = arith.constant 0 : index
    %c0_4 = arith.constant 0 : index
    %2 = vector.load %arg3[%c0_2, %c0_3, %c0_4] : memref<1x8x16xf32, #tpu.memory_space<vmem>>, vector<1x8x16xf32>
    %3 = vector.shape_cast %2 : vector<1x8x16xf32> to vector<8x16xf32>
    %4 = vector.shape_cast %1 : vector<8x16xf32> to vector<8x1x16xf32>
    %5 = vector.shape_cast %3 : vector<8x16xf32> to vector<1x8x16xf32>
    %6 = vector.broadcast %4 : vector<8x1x16xf32> to vector<8x8x16xf32>
    %7 = vector.broadcast %5 : vector<1x8x16xf32> to vector<8x8x16xf32>
    %8 = arith.subf %6, %7 : vector<8x8x16xf32>
    %9 = arith.mulf %8, %8 : vector<8x8x16xf32>
    %cst = arith.constant dense<0.000000e+00> : vector<8x8xf32>
    %10 = vector.multi_reduction <add>, %9, %cst [2] : vector<8x8x16xf32> to vector<8x8xf32>
    %cst_5 = arith.constant 0.000000e+00 : f32
    %11 = vector.broadcast %cst_5 : f32 to vector<8x8xf32>
    %12 = arith.subf %11, %10 : vector<8x8xf32>
    %c0_6 = arith.constant 0 : index
    %c0_7 = arith.constant 0 : index
    %c0_8 = arith.constant 0 : index
    %13 = vector.load %arg13[%c0_6, %c0_7, %c0_8] : memref<1x8x8xf32, #tpu.memory_space<vmem>>, vector<1x8x8xf32>
    %14 = vector.shape_cast %13 : vector<1x8x8xf32> to vector<8x8xf32>
    %15 = vector.shape_cast %12 : vector<8x8xf32> to vector<1x8x8xf32>
    tpu.vector_store %arg13[%c0_6, %c0_7, %c0_8], %15 {strides = array<i32>} : memref<1x8x8xf32, #tpu.memory_space<vmem>>, vector<1x8x8xf32>,
    %16 = vector.shape_cast %9 : vector<8x8x16xf32> to vector<64x16xf32>
    %c0_9 = arith.constant 0 : index
    %c0_10 = arith.constant 0 : index
    %17 = vector.load %arg6[%c0_9, %c0_10] : memref<16x32xf32, #tpu.memory_space<vmem>>, vector<16x32xf32>
    %cst_11 = arith.constant dense<0.000000e+00> : vector<64x32xf32>
    %18 = tpu.matmul %16, %17, %cst_11 {dimension_numbers = #tpu.dot_dimension_numbers<[1], [0], [0], [1], [0, 0, 1, 1], [], []>} : vector<64x16xf32>, vector<16x32xf32>, vector<64x32xf32> -> vector<64x32xf32>
    %c0_12 = arith.constant 0 : index
    %c0_13 = arith.constant 0 : index
    %19 = vector.load %arg7[%c0_12, %c0_13] : memref<1x32xf32, #tpu.memory_space<vmem>>, vector<1x32xf32>
    %20 = vector.broadcast %19 : vector<1x32xf32> to vector<64x32xf32>
    %21 = arith.addf %18, %20 : vector<64x32xf32>
    %cst_14 = arith.constant 0.000000e+00 : f32
    %22 = vector.broadcast %cst_14 : f32 to vector<64x32xf32>
    %23 = arith.cmpf oge, %21, %22 : vector<64x32xf32>
    %cst_15 = arith.constant 0.00999999977 : f32
    %24 = vector.broadcast %cst_15 : f32 to vector<64x32xf32>
    %25 = arith.mulf %24, %21 : vector<64x32xf32>
    %26 = arith.select %23, %21, %25 : vector<64x32xi1>, vector<64x32xf32>
    %c0_16 = arith.constant 0 : index
    %c0_17 = arith.constant 0 : index
    %27 = vector.load %arg8[%c0_16, %c0_17] : memref<32x16xf32, #tpu.memory_space<vmem>>, vector<32x16xf32>
    %cst_18 = arith.constant dense<0.000000e+00> : vector<64x16xf32>
    %28 = tpu.matmul %26, %27, %cst_18 {dimension_numbers = #tpu.dot_dimension_numbers<[1], [0], [0], [1], [0, 0, 1, 1], [], []>} : vector<64x32xf32>, vector<32x16xf32>, vector<64x16xf32> -> vector<64x16xf32>
    %c0_19 = arith.constant 0 : index
    %c0_20 = arith.constant 0 : index
    %29 = vector.load %arg9[%c0_19, %c0_20] : memref<1x16xf32, #tpu.memory_space<vmem>>, vector<1x16xf32>
    %30 = vector.broadcast %29 : vector<1x16xf32> to vector<64x16xf32>
    %31 = arith.addf %28, %30 : vector<64x16xf32>
    %cst_21 = arith.constant 0.000000e+00 : f32
    %32 = vector.broadcast %cst_21 : f32 to vector<64x16xf32>
    %33 = arith.cmpf oge, %31, %32 : vector<64x16xf32>
    %cst_22 = arith.constant 0.00999999977 : f32
    %34 = vector.broadcast %cst_22 : f32 to vector<64x16xf32>
    %35 = arith.mulf %34, %31 : vector<64x16xf32>
    %36 = arith.select %33, %31, %35 : vector<64x16xi1>, vector<64x16xf32>
    %37 = vector.shape_cast %36 : vector<64x16xf32> to vector<8x8x16xf32>
    %c0_23 = arith.constant 0 : index
    %c0_24 = arith.constant 0 : index
    %38 = vector.load %arg10[%c0_23, %c0_24] : memref<1x16xf32, #tpu.memory_space<vmem>>, vector<1x16xf32>
    %39 = vector.shape_cast %38 : vector<1x16xf32> to vector<1x1x16xf32>
    %40 = vector.broadcast %39 : vector<1x1x16xf32> to vector<8x8x16xf32>
    %41 = arith.mulf %37, %40 : vector<8x8x16xf32>
    %cst_25 = arith.constant dense<0.000000e+00> : vector<8x8xf32>
    %42 = vector.multi_reduction <add>, %41, %cst_25 [2] : vector<8x8x16xf32> to vector<8x8xf32>
    %c0_26 = arith.constant 0 : index
    %43 = memref.load %arg11[%c0_26] : memref<1xf32, #tpu.memory_space<smem>>
    %44 = vector.broadcast %43 : f32 to vector<8x8xf32>
    %45 = arith.addf %42, %44 : vector<8x8xf32>
    %cst_27 = arith.constant 0.000000e+00 : f32
    %46 = vector.broadcast %cst_27 : f32 to vector<8x8xf32>
    %47 = arith.subf %46, %45 : vector<8x8xf32>
    %48 = math.exp %47 : vector<8x8xf32>
    %cst_28 = arith.constant 1.000000e+00 : f32
    %49 = vector.broadcast %cst_28 : f32 to vector<8x8xf32>
    %50 = arith.addf %49, %48 : vector<8x8xf32>
    %51 = tpu.reciprocal %50 {approx = true} : vector<8x8xf32> -> vector<8x8xf32>
    %c0_29 = arith.constant 0 : index
    %c0_30 = arith.constant 0 : index
    %52 = vector.load %arg5[%c0_29, %c0_30] : memref<8x8xf32, #tpu.memory_space<vmem>>, vector<8x8xf32>
    %c0_31 = arith.constant 0 : index
    %c0_32 = arith.constant 0 : index
    %c0_33 = arith.constant 0 : index
    %53 = vector.load %arg4[%c0_31, %c0_32, %c0_33] : memref<1x8x8xf32, #tpu.memory_space<vmem>>, vector<1x8x8xf32>
    %54 = vector.shape_cast %53 : vector<1x8x8xf32> to vector<8x8xf32>
    %55 = arith.mulf %54, %52 : vector<8x8xf32>
    %cst_34 = arith.constant dense<0.000000e+00> : vector<8xf32>
    %56 = vector.multi_reduction <add>, %55, %cst_34 [1] : vector<8x8xf32> to vector<8xf32>
    %57 = vector.shape_cast %56 : vector<8xf32> to vector<8x1xf32>
    %58 = arith.mulf %51, %55 : vector<8x8xf32>
    %59 = math.absf %58 : vector<8x8xf32>
    %cst_35 = arith.constant dense<0.000000e+00> : vector<8xf32>
    %60 = vector.multi_reduction <add>, %59, %cst_35 [1] : vector<8x8xf32> to vector<8xf32>
    %61 = vector.shape_cast %60 : vector<8xf32> to vector<8x1xf32>
    %cst_36 = arith.constant 9.99999996E-13 : f32
    %62 = vector.broadcast %cst_36 : f32 to vector<8x1xf32>
    %63 = arith.maximumf %61, %62 : vector<8x1xf32>
    %64 = tpu.reciprocal %63 {approx = true} : vector<8x1xf32> -> vector<8x1xf32>
    %65 = arith.mulf %64, %57 : vector<8x1xf32>
    %66 = vector.broadcast %65 : vector<8x1xf32> to vector<8x8xf32>
    %67 = arith.mulf %58, %66 : vector<8x8xf32>
    %cst_37 = arith.constant 1.000000e+00 : f32
    %68 = vector.broadcast %cst_37 : f32 to vector<8x8xf32>
    %69 = arith.subf %68, %52 : vector<8x8xf32>
    %70 = arith.addf %67, %69 : vector<8x8xf32>
    %cst_38 = arith.constant 9.99999997E-7 : f32
    %71 = vector.broadcast %cst_38 : f32 to vector<8x8xf32>
    %72 = arith.addf %70, %71 : vector<8x8xf32>
    %cst_39 = arith.constant dense<0.000000e+00> : vector<8xf32>
    %73 = vector.multi_reduction <add>, %72, %cst_39 [1] : vector<8x8xf32> to vector<8xf32>
    %74 = vector.shape_cast %73 : vector<8xf32> to vector<8x1xf32>
    %75 = tpu.reciprocal %74 {approx = true} : vector<8x1xf32> -> vector<8x1xf32>
    %76 = vector.broadcast %75 : vector<8x1xf32> to vector<8x8xf32>
    %77 = arith.mulf %72, %76 : vector<8x8xf32>
    %c0_40 = arith.constant 0 : index
    %c0_41 = arith.constant 0 : index
    %c0_42 = arith.constant 0 : index
    %78 = vector.load %arg12[%c0_40, %c0_41, %c0_42] : memref<1x8x8xf32, #tpu.memory_space<vmem>>, vector<1x8x8xf32>
    %79 = vector.shape_cast %78 : vector<1x8x8xf32> to vector<8x8xf32>
    %80 = vector.shape_cast %77 : vector<8x8xf32> to vector<1x8x8xf32>
    tpu.vector_store %arg12[%c0_40, %c0_41, %c0_42], %80 {strides = array<i32>} : memref<1x8x8xf32, #tpu.memory_space<vmem>>, vector<1x8x8xf32>,
    return
  }
  func.func @transform_0(%arg0: i32, %arg1: i32) -> (i32, i32, i32) {
    %c0_i32 = arith.constant 0 : i32
    %c0_i32_0 = arith.constant 0 : i32
    return %arg0, %arg1, %c0_i32 : i32, i32, i32
  }
  func.func @transform_1(%arg0: i32, %arg1: i32) -> (i32, i32, i32) {
    %c0_i32 = arith.constant 0 : i32
    %c0_i32_0 = arith.constant 0 : i32
    %c0_i32_1 = arith.constant 0 : i32
    return %arg0, %c0_i32, %c0_i32_0 : i32, i32, i32
  }
  func.func @transform_2(%arg0: i32, %arg1: i32) -> (i32, i32, i32) {
    %c0_i32 = arith.constant 0 : i32
    %c0_i32_0 = arith.constant 0 : i32
    return %arg0, %arg1, %c0_i32 : i32, i32, i32
  }
  func.func @transform_3(%arg0: i32, %arg1: i32) -> (i32, i32) {
    %c0_i32 = arith.constant 0 : i32
    %c0_i32_0 = arith.constant 0 : i32
    return %arg1, %c0_i32 : i32, i32
  }
  func.func @transform_4(%arg0: i32, %arg1: i32) -> (i32, i32) {
    %c0_i32 = arith.constant 0 : i32
    %c0_i32_0 = arith.constant 0 : i32
    %c0_i32_1 = arith.constant 0 : i32
    return %c0_i32, %c0_i32_0 : i32, i32
  }
  func.func @transform_5(%arg0: i32, %arg1: i32) -> (i32, i32) {
    %c0_i32 = arith.constant 0 : i32
    %c0_i32_0 = arith.constant 0 : i32
    %c0_i32_1 = arith.constant 0 : i32
    return %c0_i32, %c0_i32_0 : i32, i32
  }
  func.func @transform_6(%arg0: i32, %arg1: i32) -> (i32, i32) {
    %c0_i32 = arith.constant 0 : i32
    %c0_i32_0 = arith.constant 0 : i32
    %c0_i32_1 = arith.constant 0 : i32
    return %c0_i32, %c0_i32_0 : i32, i32
  }
  func.func @transform_7(%arg0: i32, %arg1: i32) -> (i32, i32) {
    %c0_i32 = arith.constant 0 : i32
    %c0_i32_0 = arith.constant 0 : i32
    %c0_i32_1 = arith.constant 0 : i32
    return %c0_i32, %c0_i32_0 : i32, i32
  }
  func.func @transform_8(%arg0: i32, %arg1: i32) -> (i32, i32) {
    %c0_i32 = arith.constant 0 : i32
    %c0_i32_0 = arith.constant 0 : i32
    %c0_i32_1 = arith.constant 0 : i32
    return %c0_i32, %c0_i32_0 : i32, i32
  }
  func.func @transform_9(%arg0: i32, %arg1: i32) -> i32 {
    %c0_i32 = arith.constant 0 : i32
    %c0_i32_0 = arith.constant 0 : i32
    return %c0_i32 : i32
  }
  func.func @transform_10(%arg0: i32, %arg1: i32) -> (i32, i32, i32) {
    %c0_i32 = arith.constant 0 : i32
    %c0_i32_0 = arith.constant 0 : i32
    return %arg0, %arg1, %c0_i32 : i32, i32, i32
  }
  func.func @transform_11(%arg0: i32, %arg1: i32) -> (i32, i32, i32) {
    %c0_i32 = arith.constant 0 : i32
    %c0_i32_0 = arith.constant 0 : i32
    return %arg0, %arg1, %c0_i32 : i32, i32, i32
  }
}

</mosaic_0001>

<bundles_post_ra>
// kernel: point_similarity_forward.1
= control target key start
LH: loop header
LB: loop body
LE: loop exit
PB: predicated region body
PF: predicated region fallthrough
CT: control target
= control target key end

     0   :  { %s2597_s0 = inlined_call_operand.vmem [shape: f32[2,8,16], index: 0, kind: input, shape index: {}, may-alias: {0,1}]   ;;  %s2598_s1 = inlined_call_operand.vmem [shape: f32[2,8,16], index: 1, kind: input, shape index: {}, may-alias: {0,1}]   ;;  %s2599_s2 = inlined_call_operand.vmem [shape: f32[2,8,8], index: 2, kind: input, shape index: {}]   ;;  %s2600_s3 = inlined_call_operand.vmem [shape: f32[8,8], index: 3, kind: input, shape index: {}]   ;;  %s2601_s4 = inlined_call_operand.vmem [shape: f32[16,32], index: 4, kind: input, shape index: {}]   ;;  %s2602_s5 = inlined_call_operand.vmem [shape: f32[1,32], index: 5, kind: input, shape index: {}]   ;;  %s2603_s6 = inlined_call_operand.vmem [shape: f32[32,16], index: 6, kind: input, shape index: {}]   ;;  %s2604_s7 = inlined_call_operand.vmem [shape: f32[1,16], index: 7, kind: input, shape index: {}]   ;;  %s2605_s8 = inlined_call_operand.vmem [shape: f32[1,16], index: 8, kind: input, shape index: {}]   ;;  %s2606_s9 = inlined_call_operand.<no memory space> [shape: f32[1], index: 9, kind: input, shape index: {}]   ;;  %s2607_s10 = inlined_call_operand.hbm [shape: f32[2,8,8], index: 10, kind: output, shape index: {0}]   ;;  %s2608_s11 = inlined_call_operand.hbm [shape: f32[2,8,8], index: 11, kind: output, shape index: {1}]  }
   0x1   :  { %2611 = sst [smem:[#allocation9_spill]] %s2597_s0 }
   0x2   :  { %2612 = sst [smem:[#allocation10_spill]] %s2598_s1 }
   0x3   :  { %2613 = sst [smem:[#allocation11_spill]] %s2599_s2 }
   0x4   :  { %2614 = sst [smem:[#allocation12_spill]] %s2600_s3 }
   0x5   :  { %17 = sst [smem:[#allocation2]] %s2606_s9 }
   0x6   :  { %18 = vsyncpa [#allocation4], 0 }
   0x7   :  { %20 = vsyncpa [#allocation4 + $0x1], 0 }
   0x8   :  { %21 = vsyncpa [#allocation6], 0 }
   0x9   :  { %23 = vsyncpa [#allocation6 + $0x1], 0  ;;  %s2143_s19 = smov 0   ;;  %s2145_s20 = smov 0  }
   0xa   :  { %s2147_s21 = smov 0   ;;  %s2149_s22 = smov 0  }
   0xb   :  { %s2151_s23 = smov 0   ;;  %s2153_s24 = smov 0  }
   0xc LB: > { %s1773_s9 = sadd.s32 4294967295, %s2074_s24   ;;  %s1774_s25 = sadd.s32 4294967294, %s2074_s24   ;;  %s2074_s24 = sphi %s2153_s24, %s29_s24   ;;  %s2070_s23 = sphi %s2151_s23, %s2627_s23   ;;  %s2066_s22 = sphi %s2149_s22, %s2626_s22   ;;  %s2062_s21 = sphi %s2147_s21, %s2625_s21   ;;  %s2058_s20 = sphi %s2145_s20, %s2624_s20   ;;  %s2054_s19 = sphi %s2143_s19, %s2623_s19  }
   0xd   : > { %s41_s26 = sadd.s32 1, %s2070_s23  ;;  %s284_s27 = sadd.s32 1, %s2062_s21 }
   0xe   : > { %p43_p0 = scmp.ge.s32.totalorder %s41_s26, 2  ;;  %p294_p1 = scmp.ne.s32.totalorder %s2062_s21, %s2058_s20 }
   0xf   : > { %p295_p2 = scmp.eq.s32.totalorder %s1773_s9, 1  ;;  %p300_p3 = scmp.ne.s32.totalorder %s2058_s20, %s2054_s19 }
  0x10   : > { %s2629_s26 = smov (%p43_p0, %s41_s26), 0  ;;  %p301_p5 = scmp.eq.s32.totalorder %s1774_s25, 1 }
  0x11   : > { %p2183_p4 = por %p295_p2, %p294_p1  ;;  %s279_s29 = ssub.s32 %s2070_s23, %s2629_s26 }
  0x12   : > { %p1778_p6 = scmp.ge.s32.totalorder %s2074_s24, 1  ;;  %p282_p7 = scmp.eq.s32.totalorder %s279_s29, 0 }
  0x13   : > { %p2190_p8 = por %p301_p5, %p300_p3  ;;  %p399_p9 = scmp.lt.s32.totalorder %s2074_s24, 3 }
  0x14   : > { %s2196_s12 = scalar_select %p282_p7, %s2062_s21, %s284_s27  }
  0x15   : > { %p400_p10 = pnand %p1778_p6, %p399_p9 }
  0x16   : > { %p461_p11 = scmp.lt.s32.totalorder (!%p400_p10), %s2066_s22, 1  ;;  %s2617_s0 = sld [smem:[#allocation9_spill]] (!%p400_p10) }
  0x17   : > { %403 = sbr.rel (%p400_p10) target bundleno = 1389 (0x56d), region = 60  ;;  %s2618_s1 = sld [smem:[#allocation10_spill]] (!%p400_p10) }
  0x18   : > { %s2619_s2 = sld [smem:[#allocation11_spill]] (!%p400_p10)  ;;  %s2487_s16 = sand.u32 (!%p400_p10), 1, %s2058_s20  }
  0x19   : > { %s2620_s3 = sld [smem:[#allocation12_spill]] (!%p400_p10)  ;;  %s2610_s25 = sshll.u32 (!%p400_p10), %s2066_s22, 7 }
  0x1a   : > { %s1599_s15 = scalar_lea.sflag (!%p400_p10), [#allocation6], %s2487_s16 }
  0x1c   : > { %v684_v0 = vld [vmem:[%s2601_s4 + $0x8] sm:$0xff]  ;;  %v683_v1 = vld [vmem:[%s2601_s4] sm:$0xff]  ;;  %v490_v2 = vlaneseq  ;;  %v2076_v3 = vmov 1966171168   ;;  %s462_s17 = scalar_select %p461_p11, %s2066_s22, 1  ;;  %vm591_vm0 = vcmask 130048  }
  0x1d   : > { %1831 = vmatprep.subr.mxu0 %v684_v0  ;;  %v488_v4 = vunpack.c.l.s4 %v2076_v3  ;;  %v848_v48 = vld [vmem:[%s2603_s6 + $0x18] sm:$0xff]  ;;  %v847_v49 = vld [vmem:[%s2603_s6 + $0x10] sm:$0xff]  ;;  %v846_v50 = vld [vmem:[%s2603_s6 + $0x8] sm:$0xff]  ;;  %vm856_vm1 = vcmask 261120  }
  0x1e   : > { %1832 = vmatpush3.msra.mxu0 %v684_v0  ;;  %v2207_v5 = vshrl.u32 %v490_v2, 7  ;;  %s2209_s18 = sshll.u32 %s462_s17, 3  ;;  %1847 = vmatprep.subr.mxu1 %v848_v48  ;;  %v845_v51 = vld [vmem:[%s2603_s6] sm:$0xff]  ;;  %s2609_s17 = sshll.u32 %s2487_s16, 3 }
  0x1f   : > { %1833 = vmatprep.subr.mxu0 %v683_v1  ;;  %v489_v6 = vunpack.c.0.s8 %v488_v4  ;;  %s467_s27 = scalar_lea.vmem %s2617_s0, %s2209_s18  ;;  %s471_s14 = scalar_lea.vmem %s2618_s1, %s2209_s18  ;;  %1848 = vmatpush3.msra.mxu1 %v848_v48  ;;  %v1784_v52 = vld [vmem:[%s2602_s5] ss:$0 sm:$0xff] }
  0x20   : > { %1834 = vmatpush3.msra.mxu0 %v683_v1  ;;  %v483_v8 = vld [vmem:[%s467_s27] sm:$0xff]  ;;  %v2221_v11 = vsub.s32 0, %v2207_v5  ;;  %1849 = vmatprep.subr.mxu1 %v847_v49  ;;  %s478_s13 = scalar_lea.vmem %s2619_s2, %s2209_s18  ;;  %s1049_s18 = sld [smem:[#allocation2]] }
  0x21   : > { %v492_v7 = vsub.s32 %v489_v6, %v2207_v5  ;;  %v486_v9 = vcombine.high %v483_v8, %v483_v8  ;;  %v484_v15 = vld [vmem:[%s471_s14] sm:$0xff]  ;;  %1850 = vmatpush3.msra.mxu1 %v847_v49  ;;  %s460_s9 = scalar_lea.vmem [#allocation5], %s2609_s17  ;;  %s2078_s17 = smov [#allocation5]  }
  0x22   : > { %1851 = vmatprep.subr.mxu1 %v846_v50  ;;  %s1627_s14 = sshll.u32 %s460_s9, 4  ;;  %s1972_s0 = sshll.u32 %s2078_s17, 4  ;;  %s1628_s14 = int_to_ptr.vmem [resolvable:$true] %s1627_s14  ;;  %s1973_s0 = int_to_ptr.vmem [resolvable:$false] %s1972_s0 }
  0x23   : > { %v493_v10 = vrot.slane %v483_v8, %v492_v7  ;;  %v500_v12 = vrot.slane %v486_v9, %v492_v7  ;;  %1852 = vmatpush3.msra.mxu1 %v846_v50  ;;  %s1974_s1 = scalar_lea.vmem %s1973_s0, 256  ;;  %p1975_p1 = scmp.lt.s32.totalorder %s1628_s14, %s1973_s0 }
  0x24   : > { %1853 = vmatprep.subr.mxu1 %v845_v51 }
  0x25   : > { %v501_v13 = vcombine.high %v493_v10, %v493_v10  ;;  %v509_v14 = vrot.slane %v493_v10, %v492_v7  ;;  %v516_v19 = vrot.slane %v500_v12, %v492_v7  ;;  %v502_v20 = vcombine.high %v500_v12, %v500_v12  ;;  %1854 = vmatpush3.msra.mxu1 %v845_v51 }
  0x27   : > { %v531_v16 = vcombine.high %v509_v14, %v509_v14  ;;  %v538_v17 = vrot.slane %v509_v14, %v2221_v11  ;;  %v523_v18 = vrot.slane %v501_v13, %v492_v7  ;;  %v554_v25 = vrot.slane %v516_v19, %v2221_v11 }
  0x28   : > { %v530_v26 = vrot.slane %v502_v20, %v492_v7  ;;  %v532_v27 = vcombine.high %v516_v19, %v516_v19 }
  0x29   : > { %v575_v21 = vsub.f32 %v538_v17, %v484_v15  ;;  %v542_v22 = vrot.slane %v523_v18, %v2221_v11  ;;  %v546_v23 = vrot.slane %v531_v16, %v2221_v11  ;;  %v533_v24 = vcombine.high %v523_v18, %v523_v18 }
  0x2a   : > { %v579_v32 = vsub.f32 %v554_v25, %v484_v15  ;;  %v558_v33 = vrot.slane %v530_v26, %v2221_v11  ;;  %v562_v34 = vrot.slane %v532_v27, %v2221_v11  ;;  %v534_v35 = vcombine.high %v530_v26, %v530_v26 }
  0x2b   : > { %v2227_v28 = vmul.f32 %v575_v21, %v575_v21  ;;  %v576_v29 = vsub.f32 %v542_v22, %v484_v15  ;;  %v577_v30 = vsub.f32 %v546_v23, %v484_v15  ;;  %v550_v31 = vrot.slane %v533_v24, %v2221_v11  ;;  %v1793_v24 = vld [vmem:[%s2604_s7] ss:$0 sm:$0xff] }
  0x2c   : > { %v580_v40 = vsub.f32 %v558_v33, %v484_v15  ;;  %v566_v41 = vrot.slane %v534_v35, %v2221_v11  ;;  %v2245_v42 = vmul.f32 %v579_v32, %v579_v32  ;;  %v581_v43 = vsub.f32 %v562_v34, %v484_v15 }
  0x2d   : > { %1835 = vmatprep.mubr.msk.f32.mxu0 %vm591_vm0, %v2227_v28  ;;  %v2234_v36 = vmul.f32 %v576_v29, %v576_v29  ;;  %v2236_v37 = vmul.f32 %v577_v30, %v577_v30  ;;  %v578_v38 = vsub.f32 %v550_v31, %v484_v15  ;;  %v1802_v31 = vld [vmem:[%s2605_s8] ss:$0 sm:$0xff] }
  0x2e   : > { %v2249_v44 = vmul.f32 %v580_v40, %v580_v40  ;;  %v582_v45 = vsub.f32 %v566_v41, %v484_v15  ;;  %v2253_v46 = vmul.f32 %v581_v43, %v581_v43 }
  0x2f   : > { %1836 = vmatmul.mubr.msk.f32.vlgmr.msra.gmra.mxu0 %vm591_vm0, %v2234_v36  ;;  %v2240_v39 = vmul.f32 %v578_v38, %v578_v38 }
  0x30   : > { %1838 = vmatprep.mubr.msk.f32.mxu0 %vm591_vm0, %v2236_v37  ;;  %v2257_v47 = vmul.f32 %v582_v45, %v582_v45 }
  0x33   : > { %1839 = vmatmul.mubr.msk.f32.gmra.mxu0 %vm591_vm0, %v2240_v39 }
  0x34   : > { %1841 = vmatprep.mubr.msk.f32.mxu0 %vm591_vm0, %v2245_v42 }
  0x37   : > { %1842 = vmatmul.mubr.msk.f32.gmra.mxu0 %vm591_vm0, %v2249_v44 }
  0x38   : > { %1844 = vmatprep.mubr.msk.f32.mxu0 %vm591_vm0, %v2253_v46 }
  0x3b   : > { %1845 = vmatmul.mubr.msk.f32.gmra.mxu0 %vm591_vm0, %v2257_v47 }
  0xef   : > { %v1837_v53 = vpop.f32.mrf.mxu0 }
  0xf0   : > { %v788_v54 = vadd.f32 %v1837_v53, %v1784_v52 }
  0xf1   : > { %v782_v55 = vpop.f32.mrf.mxu0 }
  0xf2   : > { %v783_v56 = vadd.f32 %v1784_v52, %v782_v55  ;;  %v830_v57 = vmul.f32 0.01, %v788_v54  ;;  %vm822_vm2 = vcmp.ge.f32.partialorder %v788_v54, 0.0 }
  0xf3   : > { %v1840_v58 = vpop.f32.mrf.mxu0 }
  0xf4   : > { %v798_v59 = vadd.f32 %v1840_v58, %v1784_v52  ;;  %vm821_vm3 = vcmp.ge.f32.partialorder %v783_v56, 0.0  ;;  %v829_v60 = vmul.f32 0.01, %v783_v56  ;;  %v838_v3 = vsel %vm822_vm2, %v788_v54, %v830_v57 }
  0xf5   : > { %v792_v61 = vpop.f32.mrf.mxu0 }
  0xf6   : > { %v793_v62 = vadd.f32 %v1784_v52, %v792_v61  ;;  %v837_v63 = vsel %vm821_vm3, %v783_v56, %v829_v60  ;;  %v832_v0 = vmul.f32 0.01, %v798_v59  ;;  %vm824_vm4 = vcmp.ge.f32.partialorder %v798_v59, 0.0 }
  0xf7   : > { %v1843_v1 = vpop.f32.mrf.mxu0  ;;  %1855 = vmatprep.mubr.msk.f32.mxu1 %vm856_vm1, %v837_v63  ;;  %vm681_vm3 = vcmask 64512  }
  0xf8   : > { %vm823_vm5 = vcmp.ge.f32.partialorder %v793_v62, 0.0  ;;  %v831_v4 = vmul.f32 0.01, %v793_v62  ;;  %v808_v6 = vadd.f32 %v1843_v1, %v1784_v52  ;;  %1856 = vmatmul.mubr.msk.f32.vlgmr.msra.gmra.mxu1 %vm856_vm1, %v838_v3  ;;  %v840_v13 = vsel %vm824_vm4, %v798_v59, %v832_v0 }
  0xf9   : > { %v802_v7 = vpop.f32.mrf.mxu0  ;;  %vm666_vm4 = vcmask 1041409  }
  0xfa   : > { %v803_v8 = vadd.f32 %v1784_v52, %v802_v7  ;;  %v839_v9 = vsel %vm823_vm5, %v793_v62, %v831_v4  ;;  %v834_v10 = vmul.f32 0.01, %v808_v6  ;;  %vm826_vm6 = vcmp.ge.f32.partialorder %v808_v6, 0.0 }
  0xfb   : > { %v1846_v12 = vpop.f32.mrf.mxu0  ;;  %1858 = vmatprep.mubr.msk.f32.mxu1 %vm856_vm1, %v839_v9  ;;  %vm668_vm5 = vcmask 1042434  }
  0xfc   : > { %vm825_vm7 = vcmp.ge.f32.partialorder %v803_v8, 0.0  ;;  %v833_v14 = vmul.f32 0.01, %v803_v8  ;;  %v818_v15 = vadd.f32 %v1846_v12, %v1784_v52  ;;  %1859 = vmatmul.mubr.msk.f32.gmra.mxu1 %vm856_vm1, %v840_v13  ;;  %v842_v20 = vsel %vm826_vm6, %v808_v6, %v834_v10 }
  0xfd   : > { %v812_v16 = vpop.f32.mrf.mxu0  ;;  %vm670_vm6 = vcmask 1043459  }
  0xfe   : > { %v813_v17 = vadd.f32 %v1784_v52, %v812_v16  ;;  %v841_v18 = vsel %vm825_vm7, %v803_v8, %v833_v14  ;;  %v836_v19 = vmul.f32 0.01, %v818_v15  ;;  %vm828_vm8 = vcmp.ge.f32.partialorder %v818_v15, 0.0 }
  0xff   : > { %1861 = vmatprep.mubr.msk.f32.mxu1 %vm856_vm1, %v841_v18  ;;  %vm672_vm7 = vcmask 1044484  }
 0x100   : > { %vm827_vm9 = vcmp.ge.f32.partialorder %v813_v17, 0.0  ;;  %v835_v21 = vmul.f32 0.01, %v813_v17  ;;  %1862 = vmatmul.mubr.msk.f32.gmra.mxu1 %vm856_vm1, %v842_v20  ;;  %v844_v23 = vsel %vm828_vm8, %v818_v15, %v836_v19  ;;  %vm674_vm8 = vcmask 1045509  }
 0x102   : > { %v843_v22 = vsel %vm827_vm9, %v813_v17, %v835_v21  ;;  %v2307_v21 = vld [vmem:[%s2620_s3] sm:$0xff]  ;;  %vm676_vm9 = vcmask 1046534  }
 0x103   : > { %1864 = vmatprep.mubr.msk.f32.mxu1 %vm856_vm1, %v843_v22  ;;  %v1100_v22 = vld [vmem:[%s478_s13] sm:$0xff]  ;;  %s1625_s13 = scalar_lea.hbm %s2608_s11, %s2610_s25 }
 0x104   : > { %1865 = vmatmul.mubr.msk.f32.gmra.mxu1 %vm856_vm1, %v844_v23  ;;  %v2310_v23 = vmul.f32 %v1100_v22, %v2307_v21 }
 0x1b8   : > { %v1857_v25 = vpop.f32.mrf.mxu1 }
 0x1b9   : > { %v953_v26 = vadd.f32 %v1857_v25, %v1793_v24 }
 0x1ba   : > { %v947_v27 = vpop.f32.mrf.mxu1 }
 0x1bb   : > { %v995_v29 = vmul.f32 0.01, %v953_v26  ;;  %v948_v30 = vadd.f32 %v1793_v24, %v947_v27  ;;  %vm987_vm10 = vcmp.ge.f32.partialorder %v953_v26, 0.0  ;;  %v1109_v27 = vrot.slane %v2310_v23, %v2221_v11 }
 0x1bc   : > { %v1860_v32 = vpop.f32.mrf.mxu1 }
 0x1bd   : > { %vm986_vm11 = vcmp.ge.f32.partialorder %v948_v30, 0.0  ;;  %v994_v33 = vmul.f32 0.01, %v948_v30  ;;  %v963_v34 = vadd.f32 %v1860_v32, %v1793_v24  ;;  %v1003_v35 = vsel %vm987_vm10, %v953_v26, %v995_v29 }
 0x1be   : > { %v957_v38 = vpop.f32.mrf.mxu1  ;;  %v1018_v40 = vmul.f32 %v1802_v31, %v1003_v35  ;;  %v2318_v26 = vsub.s32 2, %v2207_v5  ;;  %v2323_v29 = vsub.s32 4, %v2207_v5  ;;  %v2338_v35 = vsub.s32 5, %v2207_v5 }
 0x1bf   : > { %v997_v41 = vmul.f32 0.01, %v963_v34  ;;  %v958_v43 = vadd.f32 %v1793_v24, %v957_v38  ;;  %v1002_v45 = vsel %vm986_vm11, %v948_v30, %v994_v33  ;;  %vm989_vm12 = vcmp.ge.f32.partialorder %v963_v34, 0.0 }
 0x1c0   : > { %v1863_v48 = vpop.f32.mrf.mxu1  ;;  %v1028_v49 = vsel %vm591_vm0, %v1018_v40, 0.0  ;;  %v1017_v50 = vmul.f32 %v1802_v31, %v1002_v45  ;;  %v1123_v30 = vrot.slane %v2310_v23, %v2318_v26  ;;  %v1137_v32 = vrot.slane %v2310_v23, %v2323_v29 }
 0x1c1   : > { %vm988_vm13 = vcmp.ge.f32.partialorder %v958_v43, 0.0  ;;  %v996_v51 = vmul.f32 0.01, %v958_v43  ;;  %v973_v52 = vadd.f32 %v1863_v48, %v1793_v24  ;;  %1029 = vadd.xlane.f32.xlu0 %v1028_v49  ;;  %v1005_v53 = vsel %vm989_vm12, %v963_v34, %v997_v41 }
 0x1c2   : > { %v967_v54 = vpop.f32.mrf.mxu1  ;;  %v1020_v55 = vmul.f32 %v1802_v31, %v1005_v53  ;;  %v1025_v60 = vsel %vm591_vm0, %v1017_v50, 0.0  ;;  %v2333_v33 = vsub.s32 6, %v2207_v5  ;;  %v1144_v40 = vrot.slane %v2310_v23, %v2338_v35 }
 0x1c3   : > { %vm991_vm14 = vcmp.ge.f32.partialorder %v973_v52, 0.0  ;;  %v999_v56 = vmul.f32 0.01, %v973_v52  ;;  %v968_v57 = vadd.f32 %v1793_v24, %v967_v54  ;;  %v1004_v58 = vsel %vm988_vm13, %v958_v43, %v996_v51 }
 0x1c4   : > { %v1866_v59 = vpop.f32.mrf.mxu1  ;;  %v1034_v61 = vsel %vm591_vm0, %v1020_v55, 0.0  ;;  %v1019_v62 = vmul.f32 %v1802_v31, %v1004_v58  ;;  %v1151_v38 = vrot.slane %v2310_v23, %v2333_v33  ;;  %v2345_v41 = vsub.s32 7, %v2207_v5 }
 0x1c5   : > { %vm990_vm15 = vcmp.ge.f32.partialorder %v968_v57, 0.0  ;;  %v998_v63 = vmul.f32 0.01, %v968_v57  ;;  %v983_v0 = vadd.f32 %v1866_v59, %v1793_v24  ;;  %1026 = vadd.xlane.f32.xlu0 %v1025_v60  ;;  %1035 = vadd.xlane.f32.xlu1 %v1034_v61  ;;  %v1007_v1 = vsel %vm991_vm14, %v973_v52, %v999_v56 }
 0x1c6   : > { %v977_v3 = vpop.f32.mrf.mxu1  ;;  %v1031_v8 = vsel %vm591_vm0, %v1019_v62, 0.0  ;;  %v1022_v10 = vmul.f32 %v1802_v31, %v1007_v1  ;;  %v1158_v43 = vrot.slane %v2310_v23, %v2345_v41  ;;  %v2077_v45 = vmov 0  }
 0x1c7   : > { %vm993_vm1 = vcmp.ge.f32.partialorder %v983_v0, 0.0  ;;  %v1001_v4 = vmul.f32 0.01, %v983_v0  ;;  %v978_v6 = vadd.f32 %v1793_v24, %v977_v3  ;;  %v1006_v7 = vsel %vm990_vm15, %v968_v57, %v998_v63  ;;  %1929 = vset.pattern.permute.xlu1 %v2077_v45  ;;  %1930 = vset.pattern.permute.xlu0 %v2077_v45 }
 0x1c8   : > { %v1021_v9 = vmul.f32 %v1802_v31, %v1006_v7  ;;  %v1040_v16 = vsel %vm591_vm0, %v1022_v10, 0.0  ;;  %v2313_v24 = vsub.s32 1, %v2207_v5  ;;  %v1050_v48 = vstv %s1049_s18  ;;  %s1968_s18 = scalar_lea.vmem %s1628_s14, 128 }
 0x1c9   : > { %vm992_vm2 = vcmp.ge.f32.partialorder %v978_v6, 0.0  ;;  %v1000_v12 = vmul.f32 0.01, %v978_v6  ;;  %1032 = vadd.xlane.f32.xlu1 %v1031_v8  ;;  %v1009_v13 = vsel %vm993_vm1, %v983_v0, %v1001_v4  ;;  %vm678_vm10 = vcmask 1047559   ;;  %p1969_p12 = scmp.ne.s32.totalorder %s1628_s14, %s1968_s18  ;;  %p1976_p2 = scmp.lt.s32.totalorder %s1974_s1, %s1968_s18 }
 0x1ca   : > { %v1037_v14 = vsel %vm591_vm0, %v1021_v9, 0.0  ;;  %v1024_v18 = vmul.f32 %v1802_v31, %v1009_v13  ;;  %v1116_v25 = vrot.slane %v2310_v23, %v2313_v24 }
 0x1cb   : > { %1038 = vadd.xlane.f32.xlu0 %v1037_v14  ;;  %v1008_v15 = vsel %vm992_vm2, %v978_v6, %v1000_v12  ;;  %p1970_p13 = pnand %p1969_p12, %p2183_p4  ;;  %p1977_p3 = por %p1976_p2, %p1975_p1 }
 0x1cc   : > { %v1023_v17 = vmul.f32 %v1802_v31, %v1008_v15  ;;  %v1046_v20 = vsel %vm591_vm0, %v1024_v18, 0.0  ;;  %v2328_v31 = vsub.s32 3, %v2207_v5 }
 0x1cd   : > { %1041 = vadd.xlane.f32.xlu1 %v1040_v16  ;;  %p1971_p0 = pneg %p1970_p13 }
 0x1ce   : > { %v1043_v19 = vsel %vm591_vm0, %v1023_v17, 0.0  ;;  %v1130_v34 = vrot.slane %v2310_v23, %v2328_v31 }
 0x1cf   : > { %1044 = vadd.xlane.f32.xlu0 %v1043_v19  ;;  %p1978_p5 = pnand %p1977_p3, %p1971_p0 }
 0x1d1   : > { %1047 = vadd.xlane.f32.xlu1 %v1046_v20 }
 0x1e2   : > { %1118 = vbcast.lane.b32.xlu1 %v1116_v25, 256 }
 0x1e5   : > { %1111 = vbcast.lane.b32.xlu0 %v1109_v27, 256 }
 0x1e6   : > { %1125 = vbcast.lane.b32.xlu1 %v1123_v30, 256 }
 0x1e9   : > { %1139 = vbcast.lane.b32.xlu0 %v1137_v32, 256 }
 0x1ea   : > { %1132 = vbcast.lane.b32.xlu1 %v1130_v34, 256 }
 0x1ed   : > { %1153 = vbcast.lane.b32.xlu0 %v1151_v38, 256 }
 0x1ee   : > { %1146 = vbcast.lane.b32.xlu1 %v1144_v40, 256 }
 0x1f2   : > { %1160 = vbcast.lane.b32.xlu1 %v1158_v43, 256 }
 0x24a   : > { %v1030_v49 = vpop.xlane.xlu0 %1029 }
 0x24b   : > { %v1052_v50 = vadd.f32 %v1050_v48, %v1030_v49 }
 0x24d   : > { %v1060_v51 = vsub.f32 0.0, %v1052_v50 }
 0x24e   : > { %v1027_v52 = vpop.xlane.xlu0 %1026  ;;  %v1036_v53 = vpop.xlane.xlu1 %1035 }
 0x24f   : > { %v1069_v54 = vmul.f32 1.442695, %v1060_v51  ;;  %v1051_v55 = vadd.f32 %v1050_v48, %v1027_v52  ;;  %v1054_v56 = vadd.f32 %v1050_v48, %v1036_v53 }
 0x251   : > { %1932 = vpow2.f32 %v1069_v54  ;;  %v1059_v57 = vsub.f32 0.0, %v1051_v55  ;;  %v1062_v58 = vsub.f32 0.0, %v1054_v56 }
 0x252   : > { %v1033_v59 = vpop.xlane.xlu1 %1032 }
 0x253   : > { %v1067_v60 = vmul.f32 1.442695, %v1059_v57  ;;  %v1073_v61 = vmul.f32 1.442695, %v1062_v58  ;;  %v1053_v62 = vadd.f32 %v1050_v48, %v1033_v59 }
 0x254   : > { %v1039_v63 = vpop.xlane.xlu0 %1038 }
 0x255   : > { %1934 = vpow2.f32 %v1067_v60  ;;  %v1061_v0 = vsub.f32 0.0, %v1053_v62  ;;  %v1055_v1 = vadd.f32 %v1050_v48, %v1039_v63 }
 0x256   : > { %1936 = vpow2.f32 %v1073_v61  ;;  %v1042_v3 = vpop.xlane.xlu1 %1041 }
 0x257   : > { %v1071_v4 = vmul.f32 1.442695, %v1061_v0  ;;  %v1063_v6 = vsub.f32 0.0, %v1055_v1  ;;  %v1056_v7 = vadd.f32 %v1050_v48, %v1042_v3 }
 0x258   : > { %v1045_v8 = vpop.xlane.xlu0 %1044 }
 0x259   : > { %1938 = vpow2.f32 %v1071_v4  ;;  %v1075_v9 = vmul.f32 1.442695, %v1063_v6  ;;  %v1064_v10 = vsub.f32 0.0, %v1056_v7  ;;  %v1057_v12 = vadd.f32 %v1050_v48, %v1045_v8 }
 0x25a   : > { %v1048_v13 = vpop.xlane.xlu1 %1047 }
 0x25b   : > { %1940 = vpow2.f32 %v1075_v9  ;;  %v1077_v14 = vmul.f32 1.442695, %v1064_v10  ;;  %v1065_v15 = vsub.f32 0.0, %v1057_v12  ;;  %v1058_v16 = vadd.f32 %v1050_v48, %v1048_v13 }
 0x25c   : > { %v1112_v57 = vpop.permute.xlu0 %1111 }
 0x25d   : > { %1942 = vpow2.f32 %v1077_v14  ;;  %v1079_v17 = vmul.f32 1.442695, %v1065_v15  ;;  %v1066_v18 = vsub.f32 0.0, %v1058_v16 }
 0x25e   : > { %v1933_v19 = vpop.eup %1932  ;;  %v1119_v38 = vpop.permute.xlu1 %1118 }
 0x25f   : > { %v1084_v20 = vadd.f32 1.0, %v1933_v19  ;;  %1944 = vpow2.f32 %v1079_v17  ;;  %v1081_v22 = vmul.f32 1.442695, %v1066_v18 }
 0x260   : > { %v1140_v63 = vpop.permute.xlu0 %1139 }
 0x261   : > { %1946 = vrcp.f32 %v1084_v20 }
 0x262   : > { %v1935_v25 = vpop.eup %1934  ;;  %1948 = vpow2.f32 %v1081_v22  ;;  %v1126_v51 = vpop.permute.xlu1 %1125  ;;  %v1313_v22 = vsub.f32 1.0, %v2307_v21  ;;  %v1102_v21 = vsel %vm681_vm3, %v2310_v23, 0.0 }
 0x263   : > { %v1937_v27 = vpop.eup %1936  ;;  %v1083_v30 = vadd.f32 1.0, %v1935_v25 }
 0x264   : > { %v1086_v32 = vadd.f32 1.0, %v1937_v27  ;;  %v1154_v13 = vpop.permute.xlu0 %1153 }
 0x265   : > { %1950 = vrcp.f32 %v1083_v30 }
 0x266   : > { %v1939_v34 = vpop.eup %1938  ;;  %1952 = vrcp.f32 %v1086_v32  ;;  %v1133_v60 = vpop.permute.xlu1 %1132  ;;  %v1325_v32 = vrot.slane %v1313_v22, %v2313_v24 }
 0x267   : > { %v1085_v40 = vadd.f32 1.0, %v1939_v34  ;;  %v1332_v34 = vrot.slane %v1313_v22, %v2318_v26 }
 0x268   : > { %v1941_v43 = vpop.eup %1940 }
 0x269   : > { %1954 = vrcp.f32 %v1085_v40  ;;  %v1087_v45 = vadd.f32 1.0, %v1941_v43  ;;  %v1339_v40 = vrot.slane %v1313_v22, %v2328_v31  ;;  %v1353_v43 = vrot.slane %v1313_v22, %v2338_v35 }
 0x26a   : > { %v1943_v48 = vpop.eup %1942  ;;  %v1147_v6 = vpop.permute.xlu1 %1146 }
 0x26b   : > { %1956 = vrcp.f32 %v1087_v45  ;;  %v1088_v49 = vadd.f32 1.0, %v1943_v48  ;;  %v1367_v45 = vrot.slane %v1313_v22, %v2345_v41  ;;  %v633_v48 = vand.u32 127, %v490_v2 }
 0x26c   : > { %v1945_v50 = vpop.eup %1944 }
 0x26d   : > { %1958 = vrcp.f32 %v1088_v49  ;;  %v1089_v52 = vadd.f32 1.0, %v1945_v50  ;;  %v2384_v49 = vsub.s32 %v633_v48, %v2207_v5 }
 0x26e   : > { %v1947_v53 = vpop.eup %1946  ;;  %v1161_v19 = vpop.permute.xlu1 %1160 }
 0x26f   : > { %v1949_v54 = vpop.eup %1948  ;;  %1960 = vrcp.f32 %v1089_v52  ;;  %v2349_v55 = vmul.f32 %v1947_v53, %v1119_v38  ;;  %v1318_v38 = vrot.slane %v1313_v22, %v2221_v11 }
 0x270   : > { %v1090_v56 = vadd.f32 1.0, %v1949_v54 }
 0x271   : > { %v1179_v58 = vand.u32 2147483647, %v2349_v55 }
 0x272   : > { %v1951_v59 = vpop.eup %1950  ;;  %1962 = vrcp.f32 %v1090_v56 }
 0x273   : > { %v1953_v61 = vpop.eup %1952  ;;  %v2352_v62 = vmul.f32 %v1951_v59, %v1112_v57  ;;  %1198 = vperm.xlu1 %1929, %v1179_v58  }
 0x274   : > { %v2354_v0 = vmul.f32 %v1953_v61, %v1133_v60 }
 0x275   : > { %v1178_v1 = vand.u32 2147483647, %v2352_v62 }
 0x276   : > { %v1955_v3 = vpop.eup %1954  ;;  %v1181_v9 = vand.u32 2147483647, %v2354_v0 }
 0x277   : > { %v2357_v4 = vmul.f32 %v1955_v3, %v1126_v51  ;;  %1195 = vperm.xlu0 %1930, %v1178_v1  }
 0x278   : > { %v1957_v7 = vpop.eup %1956 }
 0x279   : > { %v1180_v8 = vand.u32 2147483647, %v2357_v4  ;;  %v2361_v10 = vmul.f32 %v1957_v7, %v1140_v63 }
 0x27a   : > { %v1959_v12 = vpop.eup %1958 }
 0x27b   : > { %v2363_v14 = vmul.f32 %v1959_v12, %v1147_v6  ;;  %1201 = vperm.xlu1 %1929, %v1180_v8   ;;  %1204 = vperm.xlu0 %1930, %v1181_v9   ;;  %v1182_v16 = vand.u32 2147483647, %v2361_v10 }
 0x27c   : > { %v1961_v15 = vpop.eup %1960 }
 0x27d   : > { %v1183_v17 = vand.u32 2147483647, %v2363_v14  ;;  %v2367_v18 = vmul.f32 %v1961_v15, %v1154_v13 }
 0x27f   : > { %v1963_v20 = vpop.eup %1962  ;;  %1210 = vperm.xlu0 %1930, %v1183_v17   ;;  %1207 = vperm.xlu1 %1929, %v1182_v16   ;;  %v1184_v27 = vand.u32 2147483647, %v2367_v18  ;;  %v1346_v16 = vrot.slane %v1313_v22, %v2323_v29  ;;  %v1360_v17 = vrot.slane %v1313_v22, %v2333_v33 }
 0x280   : > { %v2370_v25 = vmul.f32 %v1963_v20, %v1161_v19 }
 0x282   : > { %v1185_v30 = vand.u32 2147483647, %v2370_v25 }
 0x283   : > { %1213 = vperm.xlu1 %1929, %v1184_v27  }
 0x284   : > { %1216 = vperm.xlu0 %1930, %v1185_v30  }
 0x287   : > { %1327 = vbcast.lane.b32.xlu1 %v1325_v32, 256 }
 0x28b   : > { %1334 = vbcast.lane.b32.xlu1 %v1332_v34, 256 }
 0x2a3   : > { %1103 = vadd.xlane.f32.xlu0 %v1102_v21 }
 0x2b9   : > { %1320 = vbcast.lane.b32.xlu0 %v1318_v38, 256 }
 0x2bd   : > { %1341 = vbcast.lane.b32.xlu0 %v1339_v40, 256 }
 0x2c1   : > { %1355 = vbcast.lane.b32.xlu0 %v1353_v43, 256 }
 0x2c5   : > { %1369 = vbcast.lane.b32.xlu0 %v1367_v45, 256 }
 0x2ee   : > { %v1199_v50 = vpop.permute.xlu1 %1198 }
 0x2ef   : > { %v1225_v52 = vrot.slane %v1199_v50, %v2384_v49 }
 0x2f2   : > { %v1196_v23 = vpop.permute.xlu0 %1195 }
 0x2f3   : > { %v1221_v51 = vrot.slane %v1196_v23, %v2384_v49 }
 0x2f5   : > { %v1250_v57 = vsel %vm666_vm4, %v1225_v52, %v1221_v51 }
 0x2f6   : > { %v1202_v53 = vpop.permute.xlu1 %1201  ;;  %v1205_v54 = vpop.permute.xlu0 %1204 }
 0x2f7   : > { %v1229_v56 = vrot.slane %v1202_v53, %v2384_v49  ;;  %v1233_v58 = vrot.slane %v1205_v54, %v2384_v49 }
 0x2f9   : > { %v1251_v2 = vsel %vm668_vm5, %v1229_v56, %v1250_v57 }
 0x2fa   : > { %v1208_v5 = vpop.permute.xlu1 %1207  ;;  %v1211_v59 = vpop.permute.xlu0 %1210  ;;  %v1252_v61 = vsel %vm670_vm6, %v1233_v58, %v1251_v2 }
 0x2fb   : > { %v1237_v60 = vrot.slane %v1208_v5, %v2384_v49  ;;  %v1241_v63 = vrot.slane %v1211_v59, %v2384_v49 }
 0x2fd   : > { %v1253_v1 = vsel %vm672_vm7, %v1237_v60, %v1252_v61 }
 0x2fe   : > { %v1214_v3 = vpop.permute.xlu1 %1213  ;;  %v1254_v8 = vsel %vm674_vm8, %v1241_v63, %v1253_v1 }
 0x2ff   : > { %v1245_v6 = vrot.slane %v1214_v3, %v2384_v49  ;;  %v1217_v7 = vpop.permute.xlu0 %1216 }
 0x300   : > { %v1249_v9 = vrot.slane %v1217_v7, %v2384_v49 }
 0x301   : > { %v1255_v12 = vsel %vm676_vm9, %v1245_v6, %v1254_v8 }
 0x302   : > { %v1256_v13 = vsel %vm678_vm10, %v1249_v9, %v1255_v12  ;;  %v1328_v19 = vpop.permute.xlu1 %1327 }
 0x303   : > { %v1258_v15 = vsel %vm681_vm3, %v1256_v13, 0.0 }
 0x304   : > { %1259 = vadd.xlane.f32.xlu1 %v1258_v15 }
 0x306   : > { %v1335_v20 = vpop.permute.xlu1 %1334 }
 0x315   : > { %1348 = vbcast.lane.b32.xlu1 %v1346_v16, 256 }
 0x319   : > { %1362 = vbcast.lane.b32.xlu1 %v1360_v17, 256  ;;  %v595_v17 = vsel %vm591_vm0, %v2234_v36, 0.0 }
 0x32c   : > { %v1104_v32 = vpop.xlane.xlu0 %1103 }
 0x330   : > { %v1321_v34 = vpop.permute.xlu0 %1320 }
 0x334   : > { %v1342_v45 = vpop.permute.xlu0 %1341 }
 0x338   : > { %v1356_v60 = vpop.permute.xlu0 %1355 }
 0x38d   : > { %v1260_v27 = vpop.xlane.xlu1 %1259 }
 0x38e   : > { %v1261_v30 = vmax.f32 %v1260_v27, 1e-12  ;;  %v610_v27 = vsel %vm591_vm0, %v2253_v46, 0.0 }
 0x390   : > { %1964 = vrcp.f32 %v1261_v30 }
 0x391   : > { %v1349_v57 = vpop.permute.xlu1 %1348 }
 0x39d   : > { %v1965_v21 = vpop.eup %1964 }
 0x39e   : > { %v1263_v38 = vmul.f32 %v1965_v21, %v1104_v32 }
 0x3a0   : > { %v1268_v40 = vrot.slane %v1263_v38, %v2221_v11  ;;  %v1280_v43 = vrot.slane %v1263_v38, %v2328_v31  ;;  %v1272_v48 = vrot.slane %v1263_v38, %v2313_v24  ;;  %v1276_v50 = vrot.slane %v1263_v38, %v2318_v26 }
 0x3a1   : > { %v1284_v23 = vrot.slane %v1263_v38, %v2323_v29  ;;  %v1288_v56 = vrot.slane %v1263_v38, %v2338_v35  ;;  %v1292_v59 = vrot.slane %v1263_v38, %v2333_v33 }
 0x3a2   : > { %v1305_v22 = vmul.f32 %v1268_v40, %v2352_v62  ;;  %v1306_v51 = vmul.f32 %v1272_v48, %v2349_v55  ;;  %v1307_v52 = vmul.f32 %v1276_v50, %v2357_v4  ;;  %v1308_v54 = vmul.f32 %v1280_v43, %v2354_v0 }
 0x3a3   : > { %v1309_v5 = vmul.f32 %v1284_v23, %v2361_v10  ;;  %v1310_v55 = vmul.f32 %v1288_v56, %v2363_v14  ;;  %v1296_v4 = vrot.slane %v1263_v38, %v2345_v41  ;;  %v1311_v1 = vmul.f32 %v1292_v59, %v2367_v18  ;;  %v1363_v10 = vpop.permute.xlu1 %1362  ;;  %v1370_v14 = vpop.permute.xlu0 %1369 }
 0x3a4   : > { %v1379_v53 = vadd.f32 %v1321_v34, %v1305_v22  ;;  %v1380_v58 = vadd.f32 %v1328_v19, %v1306_v51  ;;  %v1381_v62 = vadd.f32 %v1335_v20, %v1307_v52  ;;  %v1382_v61 = vadd.f32 %v1342_v45, %v1308_v54 }
 0x3a5   : > { %v1383_v0 = vadd.f32 %v1349_v57, %v1309_v5  ;;  %v1384_v7 = vadd.f32 %v1356_v60, %v1310_v55  ;;  %v1312_v8 = vmul.f32 %v1296_v4, %v2370_v25  ;;  %v1385_v12 = vadd.f32 %v1363_v10, %v1311_v1 }
 0x3a6   : > { %v2414_v2 = vadd.f32 1e-06, %v1379_v53  ;;  %v2420_v63 = vadd.f32 1e-06, %v1380_v58  ;;  %v2425_v3 = vadd.f32 1e-06, %v1381_v62 }
 0x3a7   : > { %v2427_v6 = vadd.f32 1e-06, %v1382_v61  ;;  %v2431_v9 = vadd.f32 1e-06, %v1383_v0  ;;  %v2434_v13 = vadd.f32 1e-06, %v1384_v7  ;;  %v1386_v18 = vadd.f32 %v1370_v14, %v1312_v8 }
 0x3a8   : > { %1404 = vperm.xlu1 %1929, %v2414_v2   ;;  %1407 = vperm.xlu0 %1930, %v2420_v63   ;;  %v2437_v15 = vadd.f32 1e-06, %v1385_v12  ;;  %v592_v25 = vsel %vm591_vm0, %v2227_v28, 0.0  ;;  %v598_v19 = vsel %vm591_vm0, %v2236_v37, 0.0  ;;  %v604_v20 = vsel %vm591_vm0, %v2245_v42, 0.0 }
 0x3a9   : > { %v2440_v16 = vadd.f32 1e-06, %v1386_v18  ;;  %v601_v5 = vsel %vm591_vm0, %v2240_v39, 0.0  ;;  %v607_v59 = vsel %vm591_vm0, %v2249_v44, 0.0  ;;  %v613_v62 = vsel %vm591_vm0, %v2257_v47, 0.0 }
 0x3ac   : > { %1410 = vperm.xlu1 %1929, %v2425_v3   ;;  %1413 = vperm.xlu0 %1930, %v2427_v6  }
 0x3b0   : > { %1416 = vperm.xlu1 %1929, %v2431_v9   ;;  %1419 = vperm.xlu0 %1930, %v2434_v13  }
 0x3b4   : > { %1422 = vperm.xlu1 %1929, %v2437_v15   ;;  %1425 = vperm.xlu0 %1930, %v2440_v16  }
 0x3d3   : > { %593 = vadd.xlane.f32.xlu0 %v592_v25 }
 0x3d7   : > { %596 = vadd.xlane.f32.xlu0 %v595_v17 }
 0x3db   : > { %599 = vadd.xlane.f32.xlu0 %v598_v19 }
 0x3df   : > { %605 = vadd.xlane.f32.xlu0 %v604_v20 }
 0x3e3   : > { %611 = vadd.xlane.f32.xlu0 %v610_v27 }
 0x423   : > { %v1405_v30 = vpop.permute.xlu1 %1404  ;;  %v1408_v32 = vpop.permute.xlu0 %1407 }
 0x424   : > { %v1430_v28 = vrot.slane %v1405_v30, %v2384_v49  ;;  %v1434_v34 = vrot.slane %v1408_v32, %v2384_v49 }
 0x426   : > { %v1459_v37 = vsel %vm666_vm4, %v1434_v34, %v1430_v28 }
 0x427   : > { %v1411_v36 = vpop.permute.xlu1 %1410  ;;  %v1414_v38 = vpop.permute.xlu0 %1413 }
 0x428   : > { %v1438_v21 = vrot.slane %v1411_v36, %v2384_v49  ;;  %v1442_v42 = vrot.slane %v1414_v38, %v2384_v49 }
 0x42a   : > { %v1460_v40 = vsel %vm668_vm5, %v1438_v21, %v1459_v37 }
 0x42b   : > { %v1417_v43 = vpop.permute.xlu1 %1416  ;;  %v1461_v45 = vsel %vm670_vm6, %v1442_v42, %v1460_v40  ;;  %v1420_v48 = vpop.permute.xlu0 %1419 }
 0x42c   : > { %v1446_v46 = vrot.slane %v1417_v43, %v2384_v49  ;;  %v1450_v22 = vrot.slane %v1420_v48, %v2384_v49 }
 0x42e   : > { %v1462_v50 = vsel %vm672_vm7, %v1446_v46, %v1461_v45 }
 0x42f   : > { %v1423_v23 = vpop.permute.xlu1 %1422  ;;  %v1463_v52 = vsel %vm674_vm8, %v1450_v22, %v1462_v50  ;;  %v1426_v53 = vpop.permute.xlu0 %1425 }
 0x430   : > { %v1454_v51 = vrot.slane %v1423_v23, %v2384_v49  ;;  %v1458_v54 = vrot.slane %v1426_v53, %v2384_v49 }
 0x432   : > { %v1464_v56 = vsel %vm676_vm9, %v1454_v51, %v1463_v52 }
 0x433   : > { %v1465_v57 = vsel %vm678_vm10, %v1458_v54, %v1464_v56 }
 0x434   : > { %v1467_v58 = vsel %vm681_vm3, %v1465_v57, 0.0 }
 0x435   : > { %1468 = vadd.xlane.f32.xlu1 %v1467_v58 }
 0x439   : > { %602 = vadd.xlane.f32.xlu1 %v601_v5 }
 0x43d   : > { %608 = vadd.xlane.f32.xlu1 %v607_v59 }
 0x441   : > { %614 = vadd.xlane.f32.xlu1 %v613_v62 }
 0x45c   : > { %v594_v60 = vpop.xlane.xlu0 %593 }
 0x45d   : > { %v616_v55 = vsub.f32 0.0, %v594_v60 }
 0x45f   : > { %v637_v10 = vrot.slane %v616_v55, %v2384_v49 }
 0x460   : > { %v597_v61 = vpop.xlane.xlu0 %596 }
 0x461   : > { %v617_v4 = vsub.f32 0.0, %v597_v61 }
 0x463   : > { %v641_v7 = vrot.slane %v617_v4, %v2384_v49 }
 0x464   : > { %v600_v0 = vpop.xlane.xlu0 %599 }
 0x465   : > { %v618_v1 = vsub.f32 0.0, %v600_v0  ;;  %v667_v14 = vsel %vm666_vm4, %v641_v7, %v637_v10 }
 0x467   : > { %v645_v44 = vrot.slane %v618_v1, %v2384_v49 }
 0x468   : > { %v606_v8 = vpop.xlane.xlu0 %605 }
 0x469   : > { %v620_v12 = vsub.f32 0.0, %v606_v8  ;;  %v669_v25 = vsel %vm668_vm5, %v645_v44, %v667_v14 }
 0x46b   : > { %v653_v20 = vrot.slane %v620_v12, %v2384_v49 }
 0x46c   : > { %v612_v19 = vpop.xlane.xlu0 %611 }
 0x46d   : > { %v622_v32 = vsub.f32 0.0, %v612_v19 }
 0x46f   : > { %v661_v38 = vrot.slane %v622_v32, %v2384_v49 }
 0x4be   : > { %v1469_v39 = vpop.xlane.xlu1 %1468 }
 0x4bf   : > { %1966 = vrcp.f32 %v1469_v39 }
 0x4c2   : > { %v603_v47 = vpop.xlane.xlu1 %602 }
 0x4c3   : > { %v619_v18 = vsub.f32 0.0, %v603_v47 }
 0x4c5   : > { %v649_v17 = vrot.slane %v619_v18, %v2384_v49 }
 0x4c6   : > { %v609_v27 = vpop.xlane.xlu1 %608 }
 0x4c7   : > { %v671_v30 = vsel %vm670_vm6, %v649_v17, %v669_v25  ;;  %v621_v28 = vsub.f32 0.0, %v609_v27 }
 0x4c8   : > { %v673_v36 = vsel %vm672_vm7, %v653_v20, %v671_v30 }
 0x4c9   : > { %v657_v34 = vrot.slane %v621_v28, %v2384_v49 }
 0x4ca   : > { %v615_v21 = vpop.xlane.xlu1 %614 }
 0x4cb   : > { %v675_v43 = vsel %vm674_vm8, %v657_v34, %v673_v36  ;;  %v623_v46 = vsub.f32 0.0, %v615_v21 }
 0x4cc   : > { %v1967_v37 = vpop.eup %1966  ;;  %v677_v23 = vsel %vm676_vm9, %v661_v38, %v675_v43 }
 0x4cd   : > { %v1475_v40 = vrot.slane %v1967_v37, %v2221_v11  ;;  %v1479_v42 = vrot.slane %v1967_v37, %v2313_v24  ;;  %v1491_v50 = vrot.slane %v1967_v37, %v2323_v29  ;;  %v1483_v22 = vrot.slane %v1967_v37, %v2318_v26 }
 0x4ce   : > { %v665_v11 = vrot.slane %v623_v46, %v2384_v49  ;;  %v1499_v24 = vrot.slane %v1967_v37, %v2333_v33  ;;  %v1495_v33 = vrot.slane %v1967_v37, %v2338_v35 }
 0x4cf   : > { %v1512_v45 = vmul.f32 %v1475_v40, %v2414_v2  ;;  %v1513_v48 = vmul.f32 %v1479_v42, %v2420_v63  ;;  %v1516_v51 = vmul.f32 %v1491_v50, %v2431_v9  ;;  %v1514_v52 = vmul.f32 %v1483_v22, %v2425_v3 }
 0x4d0   : > { %v1487_v2 = vrot.slane %v1967_v37, %v2328_v31  ;;  %v679_v63 = vsel %vm678_vm10, %v665_v11, %v677_v23  ;;  %v1518_v26 = vmul.f32 %v1499_v24, %v2437_v15  ;;  %v1517_v31 = vmul.f32 %v1495_v33, %v2434_v13 }
 0x4d1   : > { %1529 = vperm.xlu0 %1930, %v1512_v45   ;;  %1532 = vperm.xlu1 %1929, %v1513_v48   ;;  %682 = vst.msk [vmem:[%s460_s9] sm:$0xff] %vm681_vm3, %v679_v63  ;;  %v1503_v3 = vrot.slane %v1967_v37, %v2345_v41 }
 0x4d2   : > { %v1515_v29 = vmul.f32 %v1487_v2, %v2427_v6 }
 0x4d3   : > { %v1519_v9 = vmul.f32 %v1503_v3, %v2440_v16 }
 0x4d5   : > { %1541 = vperm.xlu0 %1930, %v1516_v51   ;;  %1535 = vperm.xlu1 %1929, %v1514_v52  }
 0x4d9   : > { %1547 = vperm.xlu0 %1930, %v1518_v26   ;;  %1538 = vperm.xlu1 %1929, %v1515_v29  }
 0x4dd   : > { %1544 = vperm.xlu1 %1929, %v1517_v31  }
 0x4e1   : > { %1550 = vperm.xlu1 %1929, %v1519_v9  }
 0x4e2   : > { %1981 = shalt.err (!%p1978_p5)
}
 0x4e3   : > { %s1982_s2 = scalar_lea.hbm %s1625_s13, 128  ;;  %s1986_s29 = scalar_lea.hbm %s2608_s11, 256 }
 0x4e4   : > { %p1983_p6 = scmp.ne.s32.totalorder %s1625_s13, %s1982_s2  ;;  %p1987_p10 = scmp.lt.s32.totalorder %s1625_s13, %s2608_s11 }
 0x4e5   : > { %p1988_p11 = scmp.lt.s32.totalorder %s1986_s29, %s1982_s2 }
 0x4e6   : > { %p1984_p7 = pnand %p1983_p6, %p2183_p4 }
 0x4e7   : > { %p1989_p12 = por %p1988_p11, %p1987_p10 }
 0x4e8   : > { %p1985_p9 = pneg %p1984_p7 }
 0x4ea   : > { %p1990_p13 = pnand %p1989_p12, %p1985_p9 }
 0x4ec   : > { %1993 = shalt.err (!%p1990_p13)
}
 0x4ed   : > { %1868 = dma.vmem_to_hbm [thread:$0]  (%p2183_p4), %s1628_s14, 128, %s1625_s13, %s1599_s15  }
 0x4ee   : > { %s2621_s0 = sshll.u32 %s2487_s16, 3  ;;  %s2622_s3 = sshll.u32 %s2066_s22, 7 }
 0x4ef   : > { %s453_s1 = scalar_lea.vmem [#allocation3], %s2621_s0  ;;  %s2554_s13 = scalar_lea.hbm %s2607_s10, %s2622_s3 }
 0x4f0   : > { %s1613_s2 = sshll.u32 %s453_s1, 4  ;;  %s1594_s14 = scalar_lea.sflag [#allocation4], %s2487_s16  ;;  %s1614_s2 = int_to_ptr.vmem [resolvable:$true] %s1613_s2 }
 0x4f1   : > { %s1994_s15 = scalar_lea.vmem %s1614_s2, 128  ;;  %s2079_s18 = smov [#allocation3]  }
 0x4f2   : > { %p1995_p0 = scmp.ne.s32.totalorder %s1614_s2, %s1994_s15  ;;  %s1998_s9 = sshll.u32 %s2079_s18, 4  ;;  %s1999_s9 = int_to_ptr.vmem [resolvable:$false] %s1998_s9 }
 0x4f3   : > { %s2000_s22 = scalar_lea.vmem %s1999_s9, 256  ;;  %p2001_p3 = scmp.lt.s32.totalorder %s1614_s2, %s1999_s9 }
 0x4f4   : > { %p1996_p1 = pnand %p1995_p0, %p2183_p4  ;;  %p2002_p5 = scmp.lt.s32.totalorder %s2000_s22, %s1994_s15 }
 0x4f6   : > { %p1997_p2 = pneg %p1996_p1  ;;  %p2003_p6 = por %p2002_p5, %p2001_p3 }
 0x4f8   : > { %p2004_p7 = pnand %p2003_p6, %p1997_p2 }
 0x54c   : > { %v1533_v35 = vpop.permute.xlu1 %1532  ;;  %v1530_v41 = vpop.permute.xlu0 %1529 }
 0x54d   : > { %v1555_v13 = vrot.slane %v1530_v41, %v2384_v49  ;;  %v1559_v15 = vrot.slane %v1533_v35, %v2384_v49 }
 0x54f   : > { %v1584_v56 = vsel %vm666_vm4, %v1559_v15, %v1555_v13 }
 0x550   : > { %v1536_v6 = vpop.permute.xlu1 %1535  ;;  %v1542_v53 = vpop.permute.xlu0 %1541 }
 0x551   : > { %v1563_v16 = vrot.slane %v1536_v6, %v2384_v49  ;;  %v1571_v59 = vrot.slane %v1542_v53, %v2384_v49 }
 0x553   : > { %v1585_v58 = vsel %vm668_vm5, %v1563_v16, %v1584_v56 }
 0x554   : > { %v1539_v54 = vpop.permute.xlu1 %1538  ;;  %v1548_v60 = vpop.permute.xlu0 %1547 }
 0x555   : > { %v1567_v57 = vrot.slane %v1539_v54, %v2384_v49  ;;  %v1579_v0 = vrot.slane %v1548_v60, %v2384_v49 }
 0x557   : > { %v1586_v5 = vsel %vm670_vm6, %v1567_v57, %v1585_v58 }
 0x558   : > { %v1545_v62 = vpop.permute.xlu1 %1544  ;;  %v1587_v55 = vsel %vm672_vm7, %v1571_v59, %v1586_v5 }
 0x559   : > { %v1575_v61 = vrot.slane %v1545_v62, %v2384_v49 }
 0x55b   : > { %v1588_v4 = vsel %vm674_vm8, %v1575_v61, %v1587_v55 }
 0x55c   : > { %v1551_v1 = vpop.permute.xlu1 %1550  ;;  %v1589_v7 = vsel %vm676_vm9, %v1579_v0, %v1588_v4 }
 0x55d   : > { %v1583_v10 = vrot.slane %v1551_v1, %v2384_v49 }
 0x55f   : > { %v1590_v39 = vsel %vm678_vm10, %v1583_v10, %v1589_v7 }
 0x560   : > { %1592 = vst.msk [vmem:[%s453_s1] sm:$0xff] %vm681_vm3, %v1590_v39 }
 0x561   : > { %2007 = shalt.err (!%p2004_p7)
}
 0x562   : > { %s2008_s27 = scalar_lea.hbm %s2554_s13, 128  ;;  %s2012_s0 = scalar_lea.hbm %s2607_s10, 256 }
 0x563   : > { %p2009_p9 = scmp.ne.s32.totalorder %s2554_s13, %s2008_s27  ;;  %p2013_p12 = scmp.lt.s32.totalorder %s2554_s13, %s2607_s10 }
 0x564   : > { %p2014_p13 = scmp.lt.s32.totalorder %s2012_s0, %s2008_s27 }
 0x565   : > { %p2010_p10 = pnand %p2009_p9, %p2183_p4 }
 0x566   : > { %p2015_p0 = por %p2014_p13, %p2013_p12 }
 0x567   : > { %p2011_p11 = pneg %p2010_p10 }
 0x569   : > { %p2016_p1 = pnand %p2015_p0, %p2011_p11 }
 0x56b   : > { %2019 = shalt.err (!%p2016_p1)
}
 0x56c   : > { %1867 = dma.vmem_to_hbm [thread:$0]  (%p2183_p4), %s1614_s2, 128, %s2554_s13, %s1594_s14  }
 0x56d PF: > { %p1878_p2 = scmp.ge.s32.totalorder %s2074_s24, 2  ;;  %s1639_s17 = sand.u32 1, %s2054_s19  }
 0x56e   : > { %s1640_s25 = scalar_lea.sflag [#allocation4], %s1639_s17 }
 0x56f   : > { %p1872_p3 = pnand %p1878_p2, %p2190_p8 }
 0x571   : > { %p1873_p5 = pneg %p1872_p3 }
 0x573   : > { %2045 = dma.done.wait (%p1873_p5), %s1640_s25, 128  }
 0x574   : > { %2047 = vsyncadd (%p1873_p5), %s1640_s25, 4294967168  ;;  %s1649_s15 = scalar_lea.sflag [#allocation6], %s1639_s17 }
 0x575   : > { %2049 = dma.done.wait (%p1873_p5), %s1649_s15, 128  }
 0x576   : > { %2051 = vsyncadd (%p1873_p5), %s1649_s15, 4294967168  ;;  %s29_s24 = sadd.s32 1, %s2074_s24   ;;  %s2623_s19 = smov %s2058_s20 }
 0x577   : > { %p26_p6 = scmp.ge.s32.totalorder %s29_s24, 4   ;;  %s2624_s20 = smov %s2062_s21 }
 0x578   : > { %s2625_s21 = smov %s2196_s12  ;;  %s2626_s22 = smov %s2070_s23 }
 0x579   : > { %s2627_s23 = smov %s2629_s26  ;;  %28 = sbr.rel (!%p26_p6) target bundleno = 12 (0xc), region = 121 }
 0x57e   :  { %1654 = vsyncpa [#allocation4], 1 }
 0x57f   :  { %1656 = vsyncpa [#allocation4 + $0x1], 1 }
 0x580   :  { %1657 = vsyncpa [#allocation6], 1 }
 0x581   :  { %1659 = vsyncpa [#allocation6 + $0x1], 1 }

</bundles_post_ra>
